<compile_context>
chip_gen: v7x
topology: tpu7x:2x2x1
jax: 0.10.0
libtpu: 0.0.40
codegen_flags: <defaults>
</compile_context>

<pallas_src>
import math
import jax
import jax.numpy as jnp
import numpy as np
from jax import lax
from jax.experimental import pallas as pl
from jax.experimental.pallas import tpu as pltpu

EPS = 1e-4  # matches eps = 0.0001 in the PyTorch module


def _round_up(n: int, m: int) -> int:
    return ((n + m - 1) // m) * m


def _make_hsn_kernel(operator: str):
    """Kernel body: x_ref (tm, K) patches, w_ref (K, Cout_pad), b_ref (1, Cout_pad).

    The filter norm (1/wnorm) is already folded into w_ref / b_ref by the wrapper,
    so the kernel only does: MXU matmul (f32 acc) + bias + optional input-norm.
    """

    def kernel(x_ref, w_ref, b_ref, o_ref):
        x = x_ref[...]                                  # (tm, K)  bf16 or f32
        w = w_ref[...]                                  # (K, Cout_pad)
        b = b_ref[...].astype(jnp.float32)              # (1, Cout_pad)

        # conv(input) + bias (bias rows are zeros for 'w_*' operators, as in PyTorch)
        y = jnp.dot(x, w, preferred_element_type=jnp.float32) + b

        if operator in ("cosine", "linear", "sigmoid"):
            # input norm: sqrt(conv(x^2, ones) + eps) == per-patch L2 norm, in f32.
            xf = x.astype(jnp.float32)
            xnorm = jnp.sqrt(jnp.sum(xf * xf, axis=-1, keepdims=True) + EPS)  # (tm, 1)
            # EUP reciprocal of the (tm,1) column + VPU broadcast multiply instead
            # of a full (tm, Cout_pad) divide.
            y = y * pl.reciprocal(xnorm, approx=True)

        # filter norm already folded into w/b -> nothing else to do for 'cosine'
        # and 'w_cosine'.
        o_ref[...] = y.astype(o_ref.dtype)

    return kernel


def hsn_conv2d(x, weight, bias, *, operator="cosine", stride=1, padding=1,
               tm=512, compute_dtype=jnp.bfloat16, out_dtype=jnp.float32):
    """Forward pass of HSNConv2d. x: [B,Cin,H,W] NCHW; returns [B,Cout,Ho,Wo] NCHW."""
    if operator not in ("none", "cosine", "w_cosine"):
        # TODO(synk): acos-based operators ('linear','sigmoid','w_linear','w_sigmoid')
        # need an arccos lowering that Mosaic does not provide.
        raise NotImplementedError(f"HSN operator '{operator}' is not implemented")

    B, Cin, H, W = x.shape
    Cout, Cin_w, KH, KW = weight.shape
    assert Cin_w == Cin

    Ho = (H + 2 * padding - KH) // stride + 1
    Wo = (W + 2 * padding - KW) // stride + 1

    # --- glue: im2col in plain JAX (rows in N,Ho,Wo order; cols (Cin, KH, KW)) ---
    xp = jnp.pad(x, ((0, 0), (0, 0), (padding, padding), (padding, padding)))
    cols = []
    for kh in range(KH):
        for kw in range(KW):
            cols.append(xp[:, :, kh:kh + stride * Ho:stride, kw:kw + stride * Wo:stride])
    patches = jnp.stack(cols, axis=-1)              # [B, Cin, Ho, Wo, KH*KW]
    patches = patches.transpose(0, 2, 3, 1, 4)      # [B, Ho, Wo, Cin, KH*KW]

    Kdim = Cin * KH * KW
    M = B * Ho * Wo
    Xm = patches.reshape(M, Kdim)

    Wm = weight.reshape(Cout, Kdim).T.astype(jnp.float32)        # [Kdim, Cout]
    if operator.startswith("w") or bias is None:
        bvec = jnp.zeros((Cout,), jnp.float32)                   # PyTorch: bias=False for 'w_*'
    else:
        bvec = bias.astype(jnp.float32)

    # Fold the grid-invariant filter norm into the weights and bias (f32, in the
    # wrapper) so the kernel never recomputes the column reduce / divide.
    if operator in ("cosine", "w_cosine"):
        w32 = weight.astype(jnp.float32)
        inv_wnorm = 1.0 / jnp.sqrt(jnp.sum(w32 * w32, axis=(1, 2, 3)) + EPS)  # (Cout,)
        Wm = Wm * inv_wnorm[None, :]
        bvec = bvec * inv_wnorm

    # Lane-dense output / full MXU N width: pad Cout up to a multiple of 128.
    Cout_pad = max(128, _round_up(Cout, 128))
    if Cout_pad != Cout:
        Wm = jnp.pad(Wm, ((0, 0), (0, Cout_pad - Cout)))
        bvec = jnp.pad(bvec, (0, Cout_pad - Cout))
    bmat = bvec.reshape(1, Cout_pad)

    # Row tile: big (amortize per-step overhead), but keep >=2 grid steps when M
    # allows so the 'parallel' axis can shard across TensorCores (v7x megacore).
    tm = _round_up(max(8, min(int(tm), _round_up(M, 8))), 8)
    while tm > 256 and pl.cdiv(M, tm) < 2:
        tm //= 2
    M_pad = _round_up(M, tm)

    # Matmul operands in compute_dtype (bf16 by default -> ~2x MXU, half the HBM
    # traffic of the patch matrix); padded rows are zero (xnorm=sqrt(eps), finite).
    Xm = jnp.pad(Xm, ((0, M_pad - M), (0, 0))).astype(compute_dtype)
    Wm = Wm.astype(compute_dtype)

    # Explicit VMEM budget: double-buffered tiles + f32 accumulator headroom.
    in_bytes = jnp.dtype(compute_dtype).itemsize
    out_bytes = jnp.dtype(out_dtype).itemsize
    vmem_needed = (2 * tm * Kdim * in_bytes            # patch tiles (double-buffered)
                   + 2 * Kdim * Cout_pad * in_bytes    # weight slab
                   + 2 * Cout_pad * 4                  # bias
                   + 2 * tm * Cout_pad * out_bytes     # output tiles
                   + tm * Cout_pad * 4)                # f32 matmul result
    vmem_limit = min(max(int(1.25 * vmem_needed) + (2 << 20), 32 << 20), 64 << 20)

    out = pl.pallas_call(
        _make_hsn_kernel(operator),
        out_shape=jax.ShapeDtypeStruct((M_pad, Cout_pad), out_dtype),
        grid_spec=pltpu.PrefetchScalarGridSpec(
            num_scalar_prefetch=0,
            grid=(M_pad // tm,),
            in_specs=[
                pl.BlockSpec((tm, Kdim), lambda i: (i, 0)),          # patch rows (tiled over M)
                pl.BlockSpec((Kdim, Cout_pad), lambda i: (0, 0)),    # full (pre-scaled) weights
                pl.BlockSpec((1, Cout_pad), lambda i: (0, 0)),       # pre-scaled bias row
            ],
            out_specs=pl.BlockSpec((tm, Cout_pad), lambda i: (i, 0)),
        ),
        compiler_params=pltpu.CompilerParams(
            dimension_semantics=("parallel",),
            vmem_limit_bytes=vmem_limit),
    )(Xm, Wm, bmat)

    out = out[:M, :Cout].astype(jnp.float32)
    out = out.reshape(B, Ho, Wo, Cout).transpose(0, 3, 1, 2)         # back to NCHW
    return out


def hsn_conv2d_reference(x, weight, bias, operator, stride, padding):
    """Pure-JAX f32 reference mirroring the PyTorch forward (for verification)."""
    dn = lax.conv_dimension_numbers(x.shape, weight.shape, ("NCHW", "OIHW", "NCHW"))
    pads = [(padding, padding), (padding, padding)]
    y = lax.conv_general_dilated(x, weight, (stride, stride), pads, dimension_numbers=dn)
    if not operator.startswith("w") and bias is not None:
        y = y + bias[None, :, None, None]
    if operator in ("cosine", "w_cosine"):
        wnorm = jnp.sqrt(jnp.sum(weight ** 2, axis=(1, 2, 3)) + EPS)[None, :, None, None]
        if operator == "cosine":
            ones = jnp.ones_like(weight)
            xnorm = jnp.sqrt(
                lax.conv_general_dilated(x * x, ones, (stride, stride), pads,
                                         dimension_numbers=dn) + EPS)
            y = y / xnorm
        y = y / wnorm
    return y


if __name__ == "__main__":
    key = jax.random.PRNGKey(0)
    k_x, k_w, k_b = jax.random.split(key, 3)

    # small, deterministic shapes: batch=2, Cin=4, Cout=8, spatial 16x16, 3x3 conv
    B, Cin, H, W = 2, 4, 16, 16
    Cout, KH, KW = 8, 3, 3
    stride, padding = 1, 1

    x = jax.random.normal(k_x, (B, Cin, H, W), jnp.float32)
    fan_in = Cin * KH * KW
    weight = jax.random.normal(k_w, (Cout, Cin, KH, KW), jnp.float32) / math.sqrt(fan_in)
    bias = 0.1 * jax.random.normal(k_b, (Cout,), jnp.float32)

    ref = hsn_conv2d_reference(x, weight, bias, "cosine", stride, padding)

    # 1) optimized default path: bf16 matmul operands, f32 accumulation
    out = hsn_conv2d(x, weight, bias, operator="cosine", stride=stride, padding=padding)
    out = jax.block_until_ready(out)
    assert out.shape == (B, Cout, H, W)
    np.testing.assert_allclose(np.asarray(out), np.asarray(ref), rtol=2e-2, atol=2e-2)

    # 2) f32 compute path (tighter check of the fused math / wnorm folding)
    out32 = hsn_conv2d(x, weight, bias, operator="cosine", stride=stride, padding=padding,
                       compute_dtype=jnp.float32)
    out32 = jax.block_until_ready(out32)
    np.testing.assert_allclose(np.asarray(out32), np.asarray(ref), rtol=5e-3, atol=5e-4)

    # 3) 'w_cosine' operator (no bias, filter norm only)
    refw = hsn_conv2d_reference(x, weight, None, "w_cosine", stride, padding)
    outw = hsn_conv2d(x, weight, None, operator="w_cosine", stride=stride, padding=padding,
                      compute_dtype=jnp.float32)
    outw = jax.block_until_ready(outw)
    np.testing.assert_allclose(np.asarray(outw), np.asarray(refw), rtol=1e-3, atol=1e-4)

    print("KERNEL_OK")
</pallas_src>

<mosaic_0001>
module attributes {stable_mosaic.version = 11 : i64} {
  func.func @kernel(%arg0: i32, %arg1: memref<256x36xbf16, #tpu.memory_space<vmem>>, %arg2: memref<36x128xbf16, #tpu.memory_space<vmem>>, %arg3: memref<1x128xf32, #tpu.memory_space<vmem>>, %arg4: memref<256x128xf32, #tpu.memory_space<vmem>>) attributes {dimension_semantics = [#tpu.dimension_semantics<parallel>], iteration_bounds = array<i64: 2>, scalar_prefetch = 0 : i64, scratch_operands = 0 : i64, tpu.core_type = #tpu.core_type<tc>, window_params = [{transform_indices = @transform_0, window_bounds = array<i64: 256, 36>}, {pipeline_mode = #tpu.pipeline_mode<synchronous>, transform_indices = @transform_1, window_bounds = array<i64: 36, 128>}, {pipeline_mode = #tpu.pipeline_mode<synchronous>, transform_indices = @transform_2, window_bounds = array<i64: 1, 128>}, {transform_indices = @transform_3, window_bounds = array<i64: 256, 128>}]} {
    %c0 = arith.constant 0 : index
    %c0_0 = arith.constant 0 : index
    %0 = vector.load %arg1[%c0, %c0_0] : memref<256x36xbf16, #tpu.memory_space<vmem>>, vector<256x36xbf16>
    %c0_1 = arith.constant 0 : index
    %c0_2 = arith.constant 0 : index
    %1 = vector.load %arg2[%c0_1, %c0_2] : memref<36x128xbf16, #tpu.memory_space<vmem>>, vector<36x128xbf16>
    %c0_3 = arith.constant 0 : index
    %c0_4 = arith.constant 0 : index
    %2 = vector.load %arg3[%c0_3, %c0_4] : memref<1x128xf32, #tpu.memory_space<vmem>>, vector<1x128xf32>
    %cst = arith.constant dense<0.000000e+00> : vector<256x128xf32>
    %3 = tpu.matmul %0, %1, %cst {dimension_numbers = #tpu.dot_dimension_numbers<[1], [0], [0], [1], [0, 0, 1, 1], [], []>} : vector<256x36xbf16>, vector<36x128xbf16>, vector<256x128xf32> -> vector<256x128xf32>
    %4 = vector.broadcast %2 : vector<1x128xf32> to vector<256x128xf32>
    %5 = arith.addf %3, %4 : vector<256x128xf32>
    %6 = arith.extf %0 : vector<256x36xbf16> to vector<256x36xf32>
    %7 = arith.mulf %6, %6 : vector<256x36xf32>
    %cst_5 = arith.constant dense<0.000000e+00> : vector<256xf32>
    %8 = vector.multi_reduction <add>, %7, %cst_5 [1] : vector<256x36xf32> to vector<256xf32>
    %9 = vector.shape_cast %8 : vector<256xf32> to vector<256x1xf32>
    %cst_6 = arith.constant 9.99999974E-5 : f32
    %10 = vector.broadcast %cst_6 : f32 to vector<256x1xf32>
    %11 = arith.addf %9, %10 : vector<256x1xf32>
    %12 = math.sqrt %11 : vector<256x1xf32>
    %13 = tpu.reciprocal %12 {approx = true} : vector<256x1xf32> -> vector<256x1xf32>
    %14 = vector.broadcast %13 : vector<256x1xf32> to vector<256x128xf32>
    %15 = arith.mulf %5, %14 : vector<256x128xf32>
    %c0_7 = arith.constant 0 : index
    %c0_8 = arith.constant 0 : index
    %16 = vector.load %arg4[%c0_7, %c0_8] : memref<256x128xf32, #tpu.memory_space<vmem>>, vector<256x128xf32>
    tpu.vector_store %arg4[%c0_7, %c0_8], %15 {strides = array<i32>} : memref<256x128xf32, #tpu.memory_space<vmem>>, vector<256x128xf32>,
    return
  }
  func.func @transform_0(%arg0: i32) -> (i32, i32) {
    %c0_i32 = arith.constant 0 : i32
    %c0_i32_0 = arith.constant 0 : i32
    return %arg0, %c0_i32 : i32, i32
  }
  func.func @transform_1(%arg0: i32) -> (i32, i32) {
    %c0_i32 = arith.constant 0 : i32
    %c0_i32_0 = arith.constant 0 : i32
    %c0_i32_1 = arith.constant 0 : i32
    return %c0_i32, %c0_i32_0 : i32, i32
  }
  func.func @transform_2(%arg0: i32) -> (i32, i32) {
    %c0_i32 = arith.constant 0 : i32
    %c0_i32_0 = arith.constant 0 : i32
    %c0_i32_1 = arith.constant 0 : i32
    return %c0_i32, %c0_i32_0 : i32, i32
  }
  func.func @transform_3(%arg0: i32) -> (i32, i32) {
    %c0_i32 = arith.constant 0 : i32
    %c0_i32_0 = arith.constant 0 : i32
    return %arg0, %c0_i32 : i32, i32
  }
}

</mosaic_0001>

<bundles_post_ra>
// kernel: tpu_custom_call.1
= control target key start
LH: loop header
LB: loop body
LE: loop exit
PB: predicated region body
PF: predicated region fallthrough
CT: control target
= control target key end

     0   :  { %8 = vsyncpa [#allocation3], 0  ;;  %s2275_s0 = inlined_call_operand.vmem [shape: bf16[512,36], index: 0, kind: input, shape index: {}]   ;;  %s2276_s1 = inlined_call_operand.vmem [shape: bf16[36,128], index: 1, kind: input, shape index: {}]   ;;  %s2277_s2 = inlined_call_operand.vmem [shape: f32[1,128], index: 2, kind: input, shape index: {}]   ;;  %s2278_s3 = inlined_call_operand.hbm [shape: f32[512,128], index: 3, kind: output, shape index: {}]  }
   0x1   :  { %10 = vsyncpa [#allocation3 + $0x1], 0  ;;  %s1519_s12 = smov 0   ;;  %s1521_s13 = smov 0  }
   0x2   :  { %s1523_s14 = smov 0   ;;  %s1525_s15 = smov 0  }
   0x3 LB: > { %s1540_s16 = sadd.s32 4294967295, %s1494_s15   ;;  %s1114_s17 = sadd.s32 4294967294, %s1494_s15   ;;  %s1494_s15 = sphi %s1525_s15, %s2284_s15   ;;  %s1490_s14 = sphi %s1523_s14, %s2283_s14   ;;  %s1486_s13 = sphi %s1521_s13, %s2282_s13   ;;  %s1482_s12 = sphi %s1519_s12, %s2281_s12  }
   0x4   : > { %s1544_s18 = sadd.s32 1, %s1494_s15   ;;  %s91_s19 = sadd.s32 1, %s1490_s14 }
   0x5   : > { %s88_s20 = ssub.s32 %s1494_s15, %s1544_s18  ;;  %p101_p0 = scmp.ne.s32.totalorder %s1490_s14, %s1486_s13 }
   0x6   : > { %p89_p1 = scmp.eq.s32.totalorder %s88_s20, 0  ;;  %p102_p2 = scmp.eq.s32.totalorder %s1540_s16, 1 }
   0x7   : > { %p107_p3 = scmp.ne.s32.totalorder %s1486_s13, %s1482_s12  ;;  %p108_p4 = scmp.eq.s32.totalorder %s1114_s17, 1 }
   0x8   : > { %s1555_s21 = scalar_select %p89_p1, %s1490_s14, %s91_s19  }
   0x9   : > { %p1557_p5 = por %p102_p2, %p101_p0  ;;  %p1561_p6 = por %p108_p4, %p107_p3 }
   0xa   : > { %p1117_p7 = scmp.ge.s32.totalorder %s1494_s15, 1  ;;  %p141_p8 = scmp.lt.s32.totalorder %s1494_s15, 3 }
   0xc   : > { %p142_p9 = pnand %p1117_p7, %p141_p8 }
   0xd   : > { %v1269_v0 = vld [vmem:[%s2276_s1] sm:$0xff] (!%p142_p9)   ;;  %v1270_v1 = vld [vmem:[%s2276_s1 + $0x8] sm:$0xff] (!%p142_p9)   ;;  %s1119_s28 = sshll.u32 (!%p142_p9), %s1540_s16, 5  ;;  %v1271_v2 = vld [vmem:[%s2276_s1 + $0x10] ss:$0 sps:$4 sm:$0x33] (!%p142_p9)  }
   0xe   : > { %145 = sbr.rel (%p142_p9) target bundleno = 288 (0x120), region = 32  ;;  %1182 = vmatprep.subr.bf16.mxu0 (!%p142_p9), %v1269_v0  ;;  %1220 = vmatprep.subr.bf16.mxu1 (!%p142_p9), %v1269_v0  ;;  %p166_p10 = scmp.lt.s32.totalorder (!%p142_p9), %s1119_s28, 63  ;;  %vm361_vm0 = vcmask (!%p142_p9), 1041408   ;;  %vm312_vm1 = vcmask (!%p142_p9), 293888  }
   0xf   : > { %1183 = vmatpush3.bf16.msra.mxu0 (!%p142_p9), %v1269_v0  ;;  %1223 = vmatpush3.bf16.msra.mxu1 (!%p142_p9), %v1269_v0  ;;  %v363_v3 = vsel (!%p142_p9), %vm361_vm0, %v1271_v2, 0  ;;  %s162_s8 = sand.u32 (!%p142_p9), 1, %s1486_s13   ;;  %s1162_s19 = sshll.u32 (!%p142_p9), %s1540_s16, 12 }
  0x10   : > { %1184 = vmatprep.subr.bf16.mxu0 (!%p142_p9), %v1270_v1  ;;  %1221 = vmatprep.subr.bf16.mxu1 (!%p142_p9), %v1270_v1  ;;  %s2071_s11 = sshll.u32 (!%p142_p9), %s162_s8, 8  ;;  %s2222_s25 = scalar_lea.hbm (!%p142_p9), %s2278_s3, %s1162_s19 }
  0x11   : > { %s2101_s17 = scalar_lea.vmem (!%p142_p9), [#allocation2], %s2071_s11  ;;  %s2234_s26 = scalar_lea.sflag (!%p142_p9), [#allocation3], %s162_s8 }
  0x12   : > { %s1052_s20 = sshll.u32 (!%p142_p9), %s2101_s17, 4  ;;  %s2224_s20 = int_to_ptr.vmem [resolvable:$true] %s1052_s20 }
  0x13   : > { %1185 = vmatpush3.bf16.msra.mxu0 (!%p142_p9), %v1270_v1  ;;  %1224 = vmatpush3.bf16.msra.mxu1 (!%p142_p9), %v1270_v1  ;;  %s1432_s27 = scalar_lea.vmem (!%p142_p9), %s2224_s20, 4096 }
  0x14   : > { %1226 = vmatprep.subr.msk.bf16.mxu0 (!%p142_p9), %vm361_vm0, %v1271_v2  ;;  %1227 = vmatprep.subr.msk.bf16.mxu1 (!%p142_p9), %vm361_vm0, %v1271_v2  ;;  %p1433_p11 = scmp.ne.s32.totalorder (!%p142_p9), %s2224_s20, %s1432_s27 }
  0x15   : > { %s2286_s28 = smov (!%p166_p10, %s1119_s28), 63 }
  0x16   : > { %s1120_s4 = sshll.u32 %s2286_s28, 2  ;;  %p1434_p12 = pnand %p1433_p11, %p1557_p5 }
  0x17   : > { %s1580_s7 = scalar_lea.vmem %s2275_s0, %s1120_s4  ;;  %1187 = vmatpush3.bf16.msra.mxu0 %v363_v3  ;;  %1225 = vmatpush3.bf16.msra.mxu1 %v363_v3  ;;  %s1496_s28 = smov [#allocation2]  }
  0x18   : > { %v175_v4 = vld [vmem:[%s1580_s7 + $0x8] sm:$0xff]   ;;  %v173_v5 = vld [vmem:[%s1580_s7] sm:$0xff]   ;;  %v178_v10 = vld [vmem:[%s1580_s7 + $0x10] sm:$0xff]   ;;  %p1435_p13 = pneg %p1434_p12  ;;  %s1436_s29 = sshll.u32 %s1496_s28, 4  ;;  %s1437_s29 = int_to_ptr.vmem [resolvable:$false] %s1436_s29 }
  0x19   : > { %v1585_v6 = vld [vmem:[%s1580_s7 + $0x40] sm:$0xff]   ;;  %v528_v7 = vunpack.c.l.bf16 %v175_v4  ;;  %v526_v8 = vunpack.c.l.bf16 %v173_v5  ;;  %v1588_v9 = vld [vmem:[%s1580_s7 + $0x48] sm:$0xff]   ;;  %v1592_v11 = vld [vmem:[%s1580_s7 + $0x50] sm:$0xff]   ;;  %v529_v12 = vunpack.c.h.bf16 %v175_v4  ;;  %v527_v13 = vunpack.c.h.bf16 %v173_v5  ;;  %1188 = vmatprep.mubr.msk.bf16.mxu0 %vm312_vm1, %v173_v5  ;;  %s1438_s30 = scalar_lea.vmem %s1437_s29, 8192  ;;  %p1439_p0 = scmp.lt.s32.totalorder %s2224_s20, %s1437_s29 }
  0x1a   : > { %v531_v16 = vunpack.c.h.bf16 %v178_v10  ;;  %1204 = vmatprep.mubr.msk.bf16.mxu1 %vm312_vm1, %v1585_v6  ;;  %v530_v19 = vunpack.c.l.bf16 %v178_v10  ;;  %v179_v20 = vld [vmem:[%s1580_s7 + $0x18] sm:$0xff]   ;;  %1189 = vmatmul.mubr.msk.bf16.vlgmr.msra.gmra.mrb[0].mxu0 %vm312_vm1, %v175_v4  ;;  %v182_v30 = vld [vmem:[%s1580_s7 + $0x20] sm:$0xff]   ;;  %v183_v38 = vld [vmem:[%s1580_s7 + $0x28] sm:$0xff]   ;;  %v543_v63 = vunpack.c.h.bf16 %v1585_v6  ;;  %v542_v3 = vunpack.c.l.bf16 %v1585_v6  ;;  %p1440_p1 = scmp.lt.s32.totalorder %s1438_s30, %s1432_s27 }
  0x1b   : > { %v560_v14 = vmul.f32 %v528_v7, %v528_v7  ;;  %v558_v15 = vmul.f32 %v526_v8, %v526_v8  ;;  %v561_v17 = vmul.f32 %v529_v12, %v529_v12  ;;  %v559_v18 = vmul.f32 %v527_v13, %v527_v13  ;;  %1205 = vmatmul.mubr.msk.bf16.vlgmr.msra.gmra.mrb[0].mxu1 %vm312_vm1, %v1588_v9  ;;  %v1606_v27 = vld [vmem:[%s1580_s7 + $0x58] sm:$0xff]   ;;  %v1613_v31 = vld [vmem:[%s1580_s7 + $0x60] sm:$0xff]   ;;  %v1624_v44 = vld [vmem:[%s1580_s7 + $0x68] sm:$0xff]  }
  0x1c   : > { %v563_v24 = vmul.f32 %v531_v16, %v531_v16  ;;  %v562_v26 = vmul.f32 %v530_v19, %v530_v19  ;;  %v533_v28 = vunpack.c.h.bf16 %v179_v20  ;;  %v532_v29 = vunpack.c.l.bf16 %v179_v20  ;;  %1192 = vmatprep.mubr.msk.bf16.mxu0 %vm312_vm1, %v178_v10  ;;  %1208 = vmatprep.mubr.msk.bf16.mxu1 %vm312_vm1, %v1592_v11  ;;  %v186_v46 = vld [vmem:[%s1580_s7 + $0x30] sm:$0xff]   ;;  %v187_v54 = vld [vmem:[%s1580_s7 + $0x38] sm:$0xff]   ;;  %p1441_p2 = por %p1440_p1, %p1439_p0 }
  0x1d   : > { %v596_v21 = vsel %vm312_vm1, %v560_v14, 0.0  ;;  %v590_v22 = vsel %vm312_vm1, %v558_v15, 0.0  ;;  %v599_v23 = vsel %vm312_vm1, %v561_v17, 0.0  ;;  %v593_v25 = vsel %vm312_vm1, %v559_v18, 0.0  ;;  %v1631_v47 = vld [vmem:[%s1580_s7 + $0x70] sm:$0xff]   ;;  %v1642_v59 = vld [vmem:[%s1580_s7 + $0x78] sm:$0xff]  }
  0x1e   : > { %597 = vadd.xlane.f32.xlu1 %v596_v21  ;;  %591 = vadd.xlane.f32.xlu0 %v590_v22  ;;  %v605_v32 = vsel %vm312_vm1, %v563_v24, 0.0  ;;  %v535_v33 = vunpack.c.h.bf16 %v182_v30  ;;  %v602_v34 = vsel %vm312_vm1, %v562_v26, 0.0  ;;  %v565_v35 = vmul.f32 %v533_v28, %v533_v28  ;;  %p1442_p3 = pnand %p1441_p2, %p1435_p13 }
  0x1f   : > { %v564_v36 = vmul.f32 %v532_v29, %v532_v29  ;;  %v534_v37 = vunpack.c.l.bf16 %v182_v30  ;;  %v537_v40 = vunpack.c.h.bf16 %v183_v38  ;;  %v536_v45 = vunpack.c.l.bf16 %v183_v38 }
  0x20   : > { %v567_v39 = vmul.f32 %v535_v33, %v535_v33  ;;  %v611_v41 = vsel %vm312_vm1, %v565_v35, 0.0  ;;  %v539_v49 = vunpack.c.h.bf16 %v186_v46  ;;  %v538_v53 = vunpack.c.l.bf16 %v186_v46 }
  0x21   : > { %v608_v42 = vsel %vm312_vm1, %v564_v36, 0.0  ;;  %v566_v43 = vmul.f32 %v534_v37, %v534_v37  ;;  %v569_v48 = vmul.f32 %v537_v40, %v537_v40  ;;  %v568_v52 = vmul.f32 %v536_v45, %v536_v45 }
  0x22   : > { %600 = vadd.xlane.f32.xlu1 %v599_v23  ;;  %594 = vadd.xlane.f32.xlu0 %v593_v25  ;;  %v617_v50 = vsel %vm312_vm1, %v567_v39, 0.0  ;;  %v571_v56 = vmul.f32 %v539_v49, %v539_v49  ;;  %v570_v58 = vmul.f32 %v538_v53, %v538_v53  ;;  %v541_v60 = vunpack.c.h.bf16 %v187_v54 }
  0x23   : > { %1193 = vmatmul.mubr.msk.bf16.gmra.mrb[4].mxu0 %vm312_vm1, %v179_v20  ;;  %1209 = vmatmul.mubr.msk.bf16.gmra.mrb[4].mxu1 %vm312_vm1, %v1606_v27  ;;  %v614_v51 = vsel %vm312_vm1, %v566_v43, 0.0  ;;  %v623_v55 = vsel %vm312_vm1, %v569_v48, 0.0  ;;  %v620_v57 = vsel %vm312_vm1, %v568_v52, 0.0  ;;  %v540_v61 = vunpack.c.l.bf16 %v187_v54 }
  0x24   : > { %1196 = vmatprep.mubr.msk.bf16.mxu0 %vm312_vm1, %v182_v30  ;;  %1212 = vmatprep.mubr.msk.bf16.mxu1 %vm312_vm1, %v1613_v31  ;;  %v629_v62 = vsel %vm312_vm1, %v571_v56, 0.0  ;;  %v626_v0 = vsel %vm312_vm1, %v570_v58, 0.0  ;;  %v573_v1 = vmul.f32 %v541_v60, %v541_v60  ;;  %v545_v4 = vunpack.c.h.bf16 %v1588_v9 }
  0x25   : > { %v572_v2 = vmul.f32 %v540_v61, %v540_v61  ;;  %v544_v5 = vunpack.c.l.bf16 %v1588_v9  ;;  %v575_v10 = vmul.f32 %v543_v63, %v543_v63  ;;  %v574_v12 = vmul.f32 %v542_v3, %v542_v3 }
  0x26   : > { %606 = vadd.xlane.f32.xlu1 %v605_v32  ;;  %603 = vadd.xlane.f32.xlu0 %v602_v34  ;;  %v635_v7 = vsel %vm312_vm1, %v573_v1, 0.0  ;;  %v577_v6 = vmul.f32 %v545_v4, %v545_v4  ;;  %v547_v13 = vunpack.c.h.bf16 %v1592_v11  ;;  %v546_v16 = vunpack.c.l.bf16 %v1592_v11 }
  0x27   : > { %v632_v8 = vsel %vm312_vm1, %v572_v2, 0.0  ;;  %v641_v14 = vsel %vm312_vm1, %v575_v10, 0.0  ;;  %v638_v9 = vsel %vm312_vm1, %v574_v12, 0.0  ;;  %v576_v15 = vmul.f32 %v544_v5, %v544_v5 }
  0x28   : > { %v647_v17 = vsel %vm312_vm1, %v577_v6, 0.0  ;;  %v579_v18 = vmul.f32 %v547_v13, %v547_v13  ;;  %v578_v20 = vmul.f32 %v546_v16, %v546_v16  ;;  %v549_v21 = vunpack.c.h.bf16 %v1606_v27 }
  0x29   : > { %v644_v19 = vsel %vm312_vm1, %v576_v15, 0.0  ;;  %v548_v22 = vunpack.c.l.bf16 %v1606_v27  ;;  %v551_v24 = vunpack.c.h.bf16 %v1613_v31  ;;  %v550_v28 = vunpack.c.l.bf16 %v1613_v31 }
  0x2a   : > { %612 = vadd.xlane.f32.xlu1 %v611_v41  ;;  %609 = vadd.xlane.f32.xlu0 %v608_v42  ;;  %v653_v23 = vsel %vm312_vm1, %v579_v18, 0.0  ;;  %v650_v11 = vsel %vm312_vm1, %v578_v20, 0.0  ;;  %v581_v25 = vmul.f32 %v549_v21, %v549_v21  ;;  %v553_v29 = vunpack.c.h.bf16 %v1624_v44 }
  0x2b   : > { %1197 = vmatmul.mubr.msk.bf16.gmra.mrb[8].mxu0 %vm312_vm1, %v183_v38  ;;  %1213 = vmatmul.mubr.msk.bf16.gmra.mrb[8].mxu1 %vm312_vm1, %v1624_v44  ;;  %v580_v26 = vmul.f32 %v548_v22, %v548_v22  ;;  %v552_v30 = vunpack.c.l.bf16 %v1624_v44  ;;  %v583_v33 = vmul.f32 %v551_v24, %v551_v24  ;;  %v582_v34 = vmul.f32 %v550_v28, %v550_v28 }
  0x2c   : > { %1200 = vmatprep.mubr.msk.bf16.mxu0 %vm312_vm1, %v186_v46  ;;  %1216 = vmatprep.mubr.msk.bf16.mxu1 %vm312_vm1, %v1631_v47  ;;  %v659_v27 = vsel %vm312_vm1, %v581_v25, 0.0  ;;  %v585_v35 = vmul.f32 %v553_v29, %v553_v29  ;;  %v555_v36 = vunpack.c.h.bf16 %v1631_v47  ;;  %v554_v39 = vunpack.c.l.bf16 %v1631_v47 }
  0x2d   : > { %v656_v32 = vsel %vm312_vm1, %v580_v26, 0.0  ;;  %v665_v37 = vsel %vm312_vm1, %v583_v33, 0.0  ;;  %v662_v31 = vsel %vm312_vm1, %v582_v34, 0.0  ;;  %v584_v38 = vmul.f32 %v552_v30, %v552_v30 }
  0x2e   : > { %618 = vadd.xlane.f32.xlu1 %v617_v50  ;;  %615 = vadd.xlane.f32.xlu0 %v614_v51  ;;  %v671_v40 = vsel %vm312_vm1, %v585_v35, 0.0  ;;  %v587_v41 = vmul.f32 %v555_v36, %v555_v36  ;;  %v586_v43 = vmul.f32 %v554_v39, %v554_v39  ;;  %v557_v44 = vunpack.c.h.bf16 %v1642_v59 }
  0x2f   : > { %v668_v42 = vsel %vm312_vm1, %v584_v38, 0.0  ;;  %v556_v45 = vunpack.c.l.bf16 %v1642_v59 }
  0x30   : > { %v677_v46 = vsel %vm312_vm1, %v587_v41, 0.0  ;;  %v674_v48 = vsel %vm312_vm1, %v586_v43, 0.0  ;;  %v589_v49 = vmul.f32 %v557_v44, %v557_v44 }
  0x31   : > { %v588_v47 = vmul.f32 %v556_v45, %v556_v45 }
  0x32   : > { %624 = vadd.xlane.f32.xlu1 %v623_v55  ;;  %621 = vadd.xlane.f32.xlu0 %v620_v57  ;;  %v683_v50 = vsel %vm312_vm1, %v589_v49, 0.0 }
  0x33   : > { %1201 = vmatmul.mubr.msk.bf16.gmra.mrb[12].mxu0 %vm312_vm1, %v187_v54  ;;  %1217 = vmatmul.mubr.msk.bf16.gmra.mrb[12].mxu1 %vm312_vm1, %v1642_v59  ;;  %v680_v51 = vsel %vm312_vm1, %v588_v47, 0.0 }
  0x36   : > { %630 = vadd.xlane.f32.xlu1 %v629_v62  ;;  %627 = vadd.xlane.f32.xlu0 %v626_v0 }
  0x3a   : > { %636 = vadd.xlane.f32.xlu1 %v635_v7  ;;  %633 = vadd.xlane.f32.xlu0 %v632_v8 }
  0x3e   : > { %642 = vadd.xlane.f32.xlu1 %v641_v14  ;;  %639 = vadd.xlane.f32.xlu0 %v638_v9 }
  0x42   : > { %648 = vadd.xlane.f32.xlu1 %v647_v17  ;;  %645 = vadd.xlane.f32.xlu0 %v644_v19 }
  0x46   : > { %654 = vadd.xlane.f32.xlu1 %v653_v23  ;;  %651 = vadd.xlane.f32.xlu0 %v650_v11 }
  0x4a   : > { %660 = vadd.xlane.f32.xlu1 %v659_v27  ;;  %657 = vadd.xlane.f32.xlu0 %v656_v32 }
  0x4e   : > { %666 = vadd.xlane.f32.xlu1 %v665_v37  ;;  %663 = vadd.xlane.f32.xlu0 %v662_v31 }
  0x52   : > { %672 = vadd.xlane.f32.xlu1 %v671_v40  ;;  %669 = vadd.xlane.f32.xlu0 %v668_v42 }
  0x56   : > { %678 = vadd.xlane.f32.xlu1 %v677_v46  ;;  %675 = vadd.xlane.f32.xlu0 %v674_v48 }
  0x5a   : > { %684 = vadd.xlane.f32.xlu1 %v683_v50  ;;  %681 = vadd.xlane.f32.xlu0 %v680_v51 }
  0xab   : > { %v598_v52 = vpop.xlane.xlu1 %597  ;;  %v592_v53 = vpop.xlane.xlu0 %591 }
  0xac   : > { %v688_v54 = vadd.f32 0.0001, %v598_v52  ;;  %v1686_v55 = vadd.f32 0.0001, %v592_v53 }
  0xae   : > { %1304 = vrsqrt.f32 %v688_v54  ;;  %vm734_vm2 = vcmp.eq.f32.partialorder %v688_v54, inf  ;;  %vm736_vm3 = vcmp.eq.f32.partialorder %v688_v54, 0.0  ;;  %v737_v8 = vand.u32 2147483648, %v688_v54 }
  0xaf   : > { %1306 = vrsqrt.f32 %v1686_v55  ;;  %v601_v56 = vpop.xlane.xlu1 %600  ;;  %v595_v57 = vpop.xlane.xlu0 %594  ;;  %vm720_vm4 = vcmp.eq.f32.partialorder %v1686_v55, inf  ;;  %vm722_vm5 = vcmp.eq.f32.partialorder %v1686_v55, 0.0  ;;  %v723_v10 = vand.u32 2147483648, %v1686_v55 }
  0xb0   : > { %v1689_v58 = vadd.f32 0.0001, %v601_v56  ;;  %v1691_v59 = vadd.f32 0.0001, %v595_v57 }
  0xb2   : > { %1308 = vrsqrt.f32 %v1689_v58  ;;  %vm741_vm6 = vcmp.eq.f32.partialorder %v1689_v58, inf  ;;  %vm743_vm7 = vcmp.eq.f32.partialorder %v1689_v58, 0.0  ;;  %v744_v17 = vand.u32 2147483648, %v1689_v58 }
  0xb3   : > { %1310 = vrsqrt.f32 %v1691_v59  ;;  %v607_v60 = vpop.xlane.xlu1 %606  ;;  %v604_v61 = vpop.xlane.xlu0 %603  ;;  %vm727_vm8 = vcmp.eq.f32.partialorder %v1691_v59, inf  ;;  %vm729_vm9 = vcmp.eq.f32.partialorder %v1691_v59, 0.0  ;;  %v730_v20 = vand.u32 2147483648, %v1691_v59 }
  0xb4   : > { %v1695_v62 = vadd.f32 0.0001, %v607_v60  ;;  %v1697_v63 = vadd.f32 0.0001, %v604_v61 }
  0xb6   : > { %1312 = vrsqrt.f32 %v1695_v62  ;;  %vm748_vm10 = vcmp.eq.f32.partialorder %v1697_v63, inf  ;;  %vm750_vm11 = vcmp.eq.f32.partialorder %v1697_v63, 0.0  ;;  %v751_v21 = vand.u32 2147483648, %v1697_v63 }
  0xb7   : > { %1314 = vrsqrt.f32 %v1697_v63  ;;  %v613_v0 = vpop.xlane.xlu1 %612  ;;  %v610_v1 = vpop.xlane.xlu0 %609  ;;  %vm755_vm12 = vcmp.eq.f32.partialorder %v1695_v62, inf  ;;  %vm757_vm14 = vcmp.eq.f32.partialorder %v1695_v62, 0.0  ;;  %v758_v33 = vand.u32 2147483648, %v1695_v62 }
  0xb8   : > { %v1305_v2 = vpop.eup %1304  ;;  %v1701_v3 = vadd.f32 0.0001, %v613_v0  ;;  %v1703_v4 = vadd.f32 0.0001, %v610_v1 }
  0xb9   : > { %v1307_v5 = vpop.eup %1306  ;;  %v733_v7 = vmul.f32 %v1305_v2, %v688_v54 }
  0xba   : > { %1316 = vrsqrt.f32 %v1701_v3  ;;  %v719_v12 = vmul.f32 %v1307_v5, %v1686_v55  ;;  %vm762_vm13 = vcmp.eq.f32.partialorder %v1703_v4, inf  ;;  %v765_v32 = vand.u32 2147483648, %v1703_v4 }
  0xbb   : > { %1318 = vrsqrt.f32 %v1703_v4  ;;  %v619_v6 = vpop.xlane.xlu1 %618  ;;  %v616_v13 = vpop.xlane.xlu0 %615  ;;  %v735_v16 = vsel %vm734_vm2, %v688_v54, %v733_v7  ;;  %vm764_vm15 = vcmp.eq.f32.partialorder %v1703_v4, 0.0  ;;  %vm769_vm0 = vcmp.eq.f32.partialorder %v1701_v3, inf }
  0xbc   : > { %v1309_v14 = vpop.eup %1308  ;;  %v1713_v9 = vadd.f32 0.0001, %v619_v6  ;;  %v1715_v15 = vadd.f32 0.0001, %v616_v13  ;;  %v738_v11 = vsel %vm736_vm3, %v737_v8, %v735_v16  ;;  %v721_v25 = vsel %vm720_vm4, %v1686_v55, %v719_v12 }
  0xbd   : > { %v1311_v18 = vpop.eup %1310  ;;  %v740_v19 = vmul.f32 %v1309_v14, %v1689_v58  ;;  %v724_v35 = vsel %vm722_vm5, %v723_v10, %v721_v25  ;;  %vm771_vm1 = vcmp.eq.f32.partialorder %v1701_v3, 0.0  ;;  %v772_v45 = vand.u32 2147483648, %v1701_v3 }
  0xbe   : > { %1320 = vrsqrt.f32 %v1713_v9  ;;  %v726_v22 = vmul.f32 %v1311_v18, %v1691_v59  ;;  %vm776_vm2 = vcmp.eq.f32.partialorder %v1715_v15, inf  ;;  %vm778_vm3 = vcmp.eq.f32.partialorder %v1715_v15, 0.0 }
  0xbf   : > { %1322 = vrsqrt.f32 %v1715_v15  ;;  %v625_v23 = vpop.xlane.xlu1 %624  ;;  %v622_v24 = vpop.xlane.xlu0 %621  ;;  %v742_v30 = vsel %vm741_vm6, %v1689_v58, %v740_v19  ;;  %v779_v56 = vand.u32 2147483648, %v1715_v15  ;;  %vm783_vm6 = vcmp.eq.f32.partialorder %v1713_v9, inf }
  0xc0   : > { %v1313_v26 = vpop.eup %1312  ;;  %v1733_v28 = vadd.f32 0.0001, %v625_v23  ;;  %v1735_v29 = vadd.f32 0.0001, %v622_v24  ;;  %1324 = vrcp.f32 %v738_v11  ;;  %v745_v38 = vsel %vm743_vm7, %v744_v17, %v742_v30 }
  0xc1   : > { %v1315_v27 = vpop.eup %1314  ;;  %v754_v36 = vmul.f32 %v1313_v26, %v1695_v62  ;;  %v728_v39 = vsel %vm727_vm8, %v1691_v59, %v726_v22  ;;  %v786_v6 = vand.u32 2147483648, %v1713_v9 }
  0xc2   : > { %v747_v34 = vmul.f32 %v1315_v27, %v1697_v63  ;;  %1326 = vrsqrt.f32 %v1735_v29  ;;  %v731_v48 = vsel %vm729_vm9, %v730_v20, %v728_v39  ;;  %vm790_vm4 = vcmp.eq.f32.partialorder %v1735_v29, inf }
  0xc3   : > { %v631_v37 = vpop.xlane.xlu1 %630  ;;  %v628_v31 = vpop.xlane.xlu0 %627  ;;  %1328 = vrsqrt.f32 %v1733_v28  ;;  %v756_v52 = vsel %vm755_vm12, %v1695_v62, %v754_v36  ;;  %vm792_vm5 = vcmp.eq.f32.partialorder %v1735_v29, 0.0  ;;  %v793_v2 = vand.u32 2147483648, %v1735_v29 }
  0xc4   : > { %v1317_v40 = vpop.eup %1316  ;;  %v1758_v41 = vadd.f32 0.0001, %v631_v37  ;;  %v1760_v42 = vadd.f32 0.0001, %v628_v31  ;;  %v749_v43 = vsel %vm748_vm10, %v1697_v63, %v747_v34  ;;  %1330 = vrcp.f32 %v724_v35 }
  0xc5   : > { %v1319_v44 = vpop.eup %1318  ;;  %1332 = vrcp.f32 %v745_v38  ;;  %v768_v49 = vmul.f32 %v1317_v40, %v1701_v3  ;;  %v752_v51 = vsel %vm750_vm11, %v751_v21, %v749_v43  ;;  %v759_v60 = vsel %vm757_vm14, %v758_v33, %v756_v52 }
  0xc6   : > { %v761_v46 = vmul.f32 %v1319_v44, %v1703_v4  ;;  %1334 = vrsqrt.f32 %v1758_v41  ;;  %vm797_vm7 = vcmp.eq.f32.partialorder %v1733_v28, inf  ;;  %vm799_vm8 = vcmp.eq.f32.partialorder %v1733_v28, 0.0 }
  0xc7   : > { %v637_v47 = vpop.xlane.xlu1 %636  ;;  %v634_v50 = vpop.xlane.xlu0 %633  ;;  %1336 = vrsqrt.f32 %v1760_v42  ;;  %v770_v1 = vsel %vm769_vm0, %v1701_v3, %v768_v49  ;;  %v800_v12 = vand.u32 2147483648, %v1733_v28  ;;  %vm785_vm9 = vcmp.eq.f32.partialorder %v1713_v9, 0.0 }
  0xc8   : > { %v1321_v53 = vpop.eup %1320  ;;  %v1780_v54 = vadd.f32 0.0001, %v637_v47  ;;  %v1782_v55 = vadd.f32 0.0001, %v634_v50  ;;  %1338 = vrcp.f32 %v731_v48  ;;  %v763_v59 = vsel %vm762_vm13, %v1703_v4, %v761_v46 }
  0xc9   : > { %v1323_v57 = vpop.eup %1322  ;;  %1340 = vrcp.f32 %v752_v51  ;;  %v782_v61 = vmul.f32 %v1321_v53, %v1713_v9  ;;  %v766_v10 = vsel %vm764_vm15, %v765_v32, %v763_v59  ;;  %v773_v16 = vsel %vm771_vm1, %v772_v45, %v770_v1 }
  0xca   : > { %v775_v58 = vmul.f32 %v1323_v57, %v1715_v15  ;;  %1342 = vrsqrt.f32 %v1780_v54  ;;  %v1800_v5 = vpop.eup %1324  ;;  %v821_v21 = vand.u32 2147483648, %v1782_v55  ;;  %vm804_vm10 = vcmp.eq.f32.partialorder %v1760_v42, inf }
  0xcb   : > { %v643_v63 = vpop.xlane.xlu1 %642  ;;  %v640_v0 = vpop.xlane.xlu0 %639  ;;  %1344 = vrsqrt.f32 %v1782_v55  ;;  %v784_v20 = vsel %vm783_vm6, %v1713_v9, %v782_v61  ;;  %vm818_vm12 = vcmp.eq.f32.partialorder %v1782_v55, inf }
  0xcc   : > { %v1803_v7 = vadd.f32 0.0001, %v643_v63  ;;  %v1805_v62 = vadd.f32 0.0001, %v640_v0  ;;  %v1327_v8 = vpop.eup %1326  ;;  %1346 = vrcp.f32 %v759_v60  ;;  %v777_v4 = vsel %vm776_vm2, %v1715_v15, %v775_v58 }
  0xcd   : > { %v1329_v13 = vpop.eup %1328  ;;  %v789_v14 = vmul.f32 %v1327_v8, %v1735_v29  ;;  %v780_v26 = vsel %vm778_vm3, %v779_v56, %v777_v4  ;;  %v787_v32 = vsel %vm785_vm9, %v786_v6, %v784_v20 }
  0xce   : > { %1348 = vrsqrt.f32 %v1803_v7  ;;  %v1820_v17 = vpop.eup %1330  ;;  %v796_v25 = vmul.f32 %v1329_v13, %v1733_v28  ;;  %vm832_vm11 = vcmp.eq.f32.partialorder %v1805_v62, inf  ;;  %vm834_vm13 = vcmp.eq.f32.partialorder %v1805_v62, 0.0 }
  0xcf   : > { %1350 = vrsqrt.f32 %v1805_v62  ;;  %v649_v18 = vpop.xlane.xlu1 %648  ;;  %v646_v19 = vpop.xlane.xlu0 %645  ;;  %v791_v24 = vsel %vm790_vm4, %v1735_v29, %v789_v14  ;;  %v835_v35 = vand.u32 2147483648, %v1805_v62  ;;  %vm839_vm14 = vcmp.eq.f32.partialorder %v1803_v7, inf }
  0xd0   : > { %v1828_v3 = vpop.eup %1332  ;;  %v1830_v22 = vadd.f32 0.0001, %v649_v18  ;;  %v1832_v23 = vadd.f32 0.0001, %v646_v19  ;;  %1352 = vrcp.f32 %v766_v10  ;;  %v794_v27 = vsel %vm792_vm5, %v793_v2, %v791_v24 }
  0xd1   : > { %v1335_v11 = vpop.eup %1334  ;;  %1354 = vrcp.f32 %v773_v16  ;;  %vm841_vm15 = vcmp.eq.f32.partialorder %v1803_v7, 0.0  ;;  %v842_v37 = vand.u32 2147483648, %v1803_v7  ;;  %v798_v40 = vsel %vm797_vm7, %v1733_v28, %v796_v25 }
  0xd2   : > { %v1337_v30 = vpop.eup %1336  ;;  %1356 = vrsqrt.f32 %v1830_v22  ;;  %v1863_v38 = vmul.f32 %v1335_v11, %v1758_v41  ;;  %vm846_vm0 = vcmp.eq.f32.partialorder %v1832_v23, inf  ;;  %vm848_vm1 = vcmp.eq.f32.partialorder %v1832_v23, 0.0 }
  0xd3   : > { %v1848_v33 = vpop.eup %1338  ;;  %1358 = vrsqrt.f32 %v1832_v23  ;;  %v655_v15 = vpop.xlane.xlu1 %654  ;;  %v803_v39 = vmul.f32 %v1337_v30, %v1760_v42  ;;  %v849_v44 = vand.u32 2147483648, %v1832_v23  ;;  %vm853_vm2 = vcmp.eq.f32.partialorder %v1830_v22, inf }
  0xd4   : > { %v652_v34 = vpop.xlane.xlu0 %651  ;;  %v1855_v29 = vpop.eup %1340  ;;  %v1857_v9 = vadd.f32 0.0001, %v655_v15  ;;  %1360 = vrcp.f32 %v780_v26  ;;  %vm855_vm3 = vcmp.eq.f32.partialorder %v1830_v22, 0.0  ;;  %v856_v49 = vand.u32 2147483648, %v1830_v22 }
  0xd5   : > { %v1859_v36 = vadd.f32 0.0001, %v652_v34  ;;  %v1343_v31 = vpop.eup %1342  ;;  %1362 = vrcp.f32 %v794_v27  ;;  %v801_v53 = vsel %vm799_vm8, %v800_v12, %v798_v40  ;;  %v1895_v59 = vsel %vm804_vm10, %v1760_v42, %v803_v39 }
  0xd6   : > { %v1345_v43 = vpop.eup %1344  ;;  %1364 = vrsqrt.f32 %v1857_v9  ;;  %v1880_v50 = vmul.f32 %v1343_v31, %v1780_v54  ;;  %vm867_vm6 = vcmp.eq.f32.partialorder %v1857_v9, inf  ;;  %v870_v8 = vand.u32 2147483648, %v1857_v9 }
  0xd7   : > { %v1873_v45 = vpop.eup %1346  ;;  %1366 = vrsqrt.f32 %v1859_v36  ;;  %v661_v46 = vpop.xlane.xlu1 %660  ;;  %v817_v57 = vmul.f32 %v1345_v43, %v1782_v55  ;;  %vm860_vm4 = vcmp.eq.f32.partialorder %v1859_v36, inf  ;;  %v863_v28 = vand.u32 2147483648, %v1859_v36 }
  0xd8   : > { %v658_v48 = vpop.xlane.xlu0 %657  ;;  %v1349_v47 = vpop.eup %1348  ;;  %v1882_v51 = vadd.f32 0.0001, %v661_v46  ;;  %1368 = vrcp.f32 %v787_v32  ;;  %vm862_vm5 = vcmp.eq.f32.partialorder %v1859_v36, 0.0  ;;  %v807_v19 = vand.u32 2147483648, %v1760_v42 }
  0xd9   : > { %v1884_v52 = vadd.f32 0.0001, %v658_v48  ;;  %v1351_v56 = vpop.eup %1350  ;;  %v838_v58 = vmul.f32 %v1349_v47, %v1803_v7  ;;  %v1925_v18 = vsel %vm818_vm12, %v1782_v55, %v817_v57  ;;  %vm869_vm8 = vcmp.eq.f32.partialorder %v1857_v9, 0.0 }
  0xda   : > { %v1897_v60 = vpop.eup %1352  ;;  %v831_v61 = vmul.f32 %v1351_v56, %v1805_v62  ;;  %1370 = vrsqrt.f32 %v1882_v51  ;;  %vm881_vm10 = vcmp.eq.f32.partialorder %v1882_v51, inf  ;;  %v884_v31 = vand.u32 2147483648, %v1882_v51 }
  0xdb   : > { %v1903_v63 = vpop.eup %1354  ;;  %1372 = vrsqrt.f32 %v1884_v52  ;;  %v667_v0 = vpop.xlane.xlu1 %666  ;;  %v840_v2 = vsel %vm839_vm14, %v1803_v7, %v838_v58  ;;  %vm874_vm7 = vcmp.eq.f32.partialorder %v1884_v52, inf  ;;  %vm876_vm9 = vcmp.eq.f32.partialorder %v1884_v52, 0.0 }
  0xdc   : > { %v664_v1 = vpop.xlane.xlu0 %663  ;;  %v1357_v10 = vpop.eup %1356  ;;  %v1912_v12 = vadd.f32 0.0001, %v667_v0  ;;  %v833_v13 = vsel %vm832_vm11, %v1805_v62, %v831_v61  ;;  %1374 = vrcp.f32 %v801_v53  ;;  %v843_v4 = vsel %vm841_vm15, %v842_v37, %v840_v2 }
  0xdd   : > { %v1914_v6 = vadd.f32 0.0001, %v664_v1  ;;  %v1359_v14 = vpop.eup %1358  ;;  %v852_v16 = vmul.f32 %v1357_v10, %v1830_v22  ;;  %v836_v11 = vsel %vm834_vm13, %v835_v35, %v833_v13  ;;  %v877_v27 = vand.u32 2147483648, %v1884_v52 }
  0xde   : > { %v1928_v20 = vpop.eup %1360  ;;  %v845_v24 = vmul.f32 %v1359_v14, %v1832_v23  ;;  %1376 = vrsqrt.f32 %v1912_v12  ;;  %vm883_vm11 = vcmp.eq.f32.partialorder %v1882_v51, 0.0  ;;  %vm820_vm14 = vcmp.eq.f32.partialorder %v1782_v55, 0.0 }
  0xdf   : > { %v1936_v7 = vpop.eup %1362  ;;  %1378 = vrsqrt.f32 %v1914_v6  ;;  %v673_v25 = vpop.xlane.xlu1 %672  ;;  %v854_v30 = vsel %vm853_vm2, %v1830_v22, %v852_v16  ;;  %vm888_vm12 = vcmp.eq.f32.partialorder %v1914_v6, inf  ;;  %vm890_vm13 = vcmp.eq.f32.partialorder %v1914_v6, 0.0 }
  0xe0   : > { %v670_v26 = vpop.xlane.xlu0 %669  ;;  %v1365_v62 = vpop.eup %1364  ;;  %v1945_v32 = vadd.f32 0.0001, %v673_v25  ;;  %v847_v34 = vsel %vm846_vm0, %v1832_v23, %v845_v24  ;;  %1380 = vrcp.f32 %v843_v4  ;;  %v857_v43 = vsel %vm855_vm3, %v856_v49, %v854_v30 }
  0xe1   : > { %v1947_v15 = vadd.f32 0.0001, %v670_v26  ;;  %v1367_v35 = vpop.eup %1366  ;;  %v850_v37 = vsel %vm848_vm1, %v849_v44, %v847_v34  ;;  %1382 = vrcp.f32 %v836_v11  ;;  %v866_v39 = vmul.f32 %v1365_v62, %v1857_v9 }
  0xe2   : > { %v859_v40 = vmul.f32 %v1367_v35, %v1859_v36  ;;  %1384 = vrsqrt.f32 %v1945_v32  ;;  %v1961_v46 = vpop.eup %1368  ;;  %v891_v48 = vand.u32 2147483648, %v1914_v6  ;;  %vm806_vm15 = vcmp.eq.f32.partialorder %v1760_v42, 0.0 }
  0xe3   : > { %1386 = vrsqrt.f32 %v1947_v15  ;;  %v679_v23 = vpop.xlane.xlu1 %678  ;;  %vm902_vm0 = vcmp.eq.f32.partialorder %v1947_v15, inf  ;;  %vm895_vm1 = vcmp.eq.f32.partialorder %v1912_v12, inf  ;;  %v868_v1 = vsel %vm867_vm6, %v1857_v9, %v866_v39 }
  0xe4   : > { %v676_v44 = vpop.xlane.xlu0 %675  ;;  %v1371_v47 = vpop.eup %1370  ;;  %v1968_v53 = vadd.f32 0.0001, %v679_v23  ;;  %1388 = vrcp.f32 %v850_v37  ;;  %v861_v22 = vsel %vm860_vm4, %v1859_v36, %v859_v40  ;;  %vm904_vm2 = vcmp.eq.f32.partialorder %v1947_v15, 0.0 }
  0xe5   : > { %v1970_v56 = vadd.f32 0.0001, %v676_v44  ;;  %v1373_v49 = vpop.eup %1372  ;;  %v880_v57 = vmul.f32 %v1371_v47, %v1882_v51  ;;  %1390 = vrcp.f32 %v857_v43  ;;  %v864_v0 = vsel %vm862_vm5, %v863_v28, %v861_v22 }
  0xe6   : > { %v1979_v58 = vpop.eup %1374  ;;  %v873_v61 = vmul.f32 %v1373_v49, %v1884_v52  ;;  %1392 = vrsqrt.f32 %v1968_v53  ;;  %v905_v13 = vand.u32 2147483648, %v1947_v15  ;;  %vm909_vm3 = vcmp.eq.f32.partialorder %v1945_v32, inf }
  0xe7   : > { %1394 = vrsqrt.f32 %v1970_v56  ;;  %v685_v2 = vpop.xlane.xlu1 %684  ;;  %v882_v28 = vsel %vm881_vm10, %v1882_v51, %v880_v57  ;;  %v871_v25 = vsel %vm869_vm8, %v870_v8, %v868_v1  ;;  %v898_v26 = vand.u32 2147483648, %v1912_v12 }
  0xe8   : > { %v682_v10 = vpop.xlane.xlu0 %681  ;;  %v1377_v14 = vpop.eup %1376  ;;  %v1994_v16 = vadd.f32 0.0001, %v685_v2  ;;  %v875_v36 = vsel %vm874_vm7, %v1884_v52, %v873_v61  ;;  %1396 = vrcp.f32 %v864_v0  ;;  %vm897_vm4 = vcmp.eq.f32.partialorder %v1912_v12, 0.0 }
  0xe9   : > { %v1996_v4 = vadd.f32 0.0001, %v682_v10  ;;  %v1379_v24 = vpop.eup %1378  ;;  %v894_v11 = vmul.f32 %v1377_v14, %v1912_v12  ;;  %v878_v34 = vsel %vm876_vm9, %v877_v27, %v875_v36  ;;  %v885_v9 = vsel %vm883_vm11, %v884_v31, %v882_v28 }
  0xea   : > { %v2010_v30 = vpop.eup %1380  ;;  %v887_v62 = vmul.f32 %v1379_v24, %v1914_v6  ;;  %1398 = vrsqrt.f32 %v1994_v16  ;;  %vm911_vm5 = vcmp.eq.f32.partialorder %v1945_v32, 0.0  ;;  %v940_v52 = vand.u32 2147483648, %v1994_v16 }
  0xeb   : > { %v2017_v35 = vpop.eup %1382  ;;  %1400 = vrsqrt.f32 %v1996_v4  ;;  %v896_v8 = vsel %vm895_vm1, %v1912_v12, %v894_v11  ;;  %v912_v39 = vand.u32 2147483648, %v1945_v32  ;;  %vm930_vm6 = vcmp.eq.f32.partialorder %v1996_v4, inf }
  0xec   : > { %v1385_v37 = vpop.eup %1384  ;;  %1402 = vrcp.f32 %v871_v25  ;;  %v889_v27 = vsel %vm888_vm12, %v1914_v6, %v887_v62  ;;  %v899_v43 = vsel %vm897_vm4, %v898_v26, %v896_v8  ;;  %v933_v47 = vand.u32 2147483648, %v1996_v4 }
  0xed   : > { %v1387_v40 = vpop.eup %1386  ;;  %v908_v51 = vmul.f32 %v1385_v37, %v1945_v32  ;;  %1404 = vrcp.f32 %v878_v34  ;;  %v892_v31 = vsel %vm890_vm13, %v891_v48, %v889_v27  ;;  %v822_v22 = vsel %vm820_vm14, %v821_v21, %v1925_v18  ;;  %v2061_v21 = vld [vmem:[%s2277_s2] ss:$0 sm:$0xff] }
  0xee   : > { %v1389_v23 = vpop.eup %1388  ;;  %v901_v44 = vmul.f32 %v1387_v40, %v1947_v15  ;;  %1406 = vrcp.f32 %v885_v9  ;;  %vm937_vm7 = vcmp.eq.f32.partialorder %v1994_v16, inf  ;;  %vm932_vm8 = vcmp.eq.f32.partialorder %v1996_v4, 0.0  ;;  %v1206_v61 = vpop.f32.mrb[0].mxu1 }
  0xef   : > { %v2045_v49 = vpop.eup %1390  ;;  %1408 = vrcp.f32 %v892_v31  ;;  %v910_v12 = vsel %vm909_vm3, %v1945_v32, %v908_v51  ;;  %v808_v6 = vsel %vm806_vm15, %v807_v19, %v1895_v59  ;;  %vm916_vm9 = vcmp.eq.f32.partialorder %v1970_v56, inf  ;;  %v1190_v32 = vpop.f32.mrb[0].mxu0 }
  0xf0   : > { %v1393_v55 = vpop.eup %1392  ;;  %v903_v18 = vsel %vm902_vm0, %v1947_v15, %v901_v44  ;;  %v913_v48 = vsel %vm911_vm5, %v912_v39, %v910_v12  ;;  %1410 = vrcp.f32 %v899_v43  ;;  %vm825_vm10 = vcmp.eq.f32.partialorder %v1780_v54, inf  ;;  %v399_v10 = vpop.f32.mrb[1].mxu0 }
  0xf1   : > { %v1395_v42 = vpop.eup %1394  ;;  %v906_v59 = vsel %vm904_vm2, %v905_v13, %v903_v18  ;;  %1412 = vrcp.f32 %v822_v22  ;;  %vm918_vm11 = vcmp.eq.f32.partialorder %v1970_v56, 0.0  ;;  %v826_v19 = vsel %vm825_vm10, %v1780_v54, %v1880_v50  ;;  %v463_v13 = vpop.f32.mrb[1].mxu1 }
  0xf2   : > { %v915_v57 = vmul.f32 %v1395_v42, %v1970_v56  ;;  %1414 = vrcp.f32 %v913_v48  ;;  %vm827_vm12 = vcmp.eq.f32.partialorder %v1780_v54, 0.0  ;;  %v828_v0 = vand.u32 2147483648, %v1780_v54  ;;  %v2081_v1 = vpop.eup %1396  ;;  %v1191_v24 = vpop.f32.mrb[2].mxu0 }
  0xf3   : > { %v408_v15 = vadd.f32 %v1190_v32, %v2061_v21  ;;  %v472_v2 = vadd.f32 %v1206_v61, %v2061_v21  ;;  %1416 = vrcp.f32 %v906_v59  ;;  %v919_v50 = vand.u32 2147483648, %v1970_v56  ;;  %v1207_v11 = vpop.f32.mrb[2].mxu1  ;;  %v402_v37 = vpop.f32.mrb[3].mxu0 }
  0xf4   : > { %v1399_v14 = vpop.eup %1398  ;;  %v400_v36 = vadd.f32 %v2061_v21, %v399_v10  ;;  %v464_v28 = vadd.f32 %v2061_v21, %v463_v13  ;;  %v917_v54 = vsel %vm916_vm9, %v1970_v56, %v915_v57  ;;  %v829_v25 = vsel %vm827_vm12, %v828_v0, %v826_v19  ;;  %v466_v27 = vpop.f32.mrb[3].mxu1 }
  0xf5   : > { %v1401_v26 = vpop.eup %1400  ;;  %v936_v62 = vmul.f32 %v1399_v14, %v1994_v16  ;;  %v976_v34 = vmul.f32 %v1800_v5, %v408_v15  ;;  %v992_v9 = vmul.f32 %v1389_v23, %v472_v2  ;;  %v411_v8 = vadd.f32 %v1191_v24, %v2061_v21 }
  0xf6   : > { %v2094_v39 = vpop.eup %1402  ;;  %v929_v40 = vmul.f32 %v1401_v26, %v1996_v4  ;;  %v974_v51 = vmul.f32 %v1820_v17, %v400_v36  ;;  %v990_v31 = vmul.f32 %v2017_v35, %v464_v28  ;;  %v475_v43 = vadd.f32 %v1207_v11, %v2061_v21  ;;  %v1210_v59 = vpop.f32.mrb[4].mxu1 }
  0xf7   : > { %v1405_v44 = vpop.eup %1404  ;;  %1008 = vst [vmem:[%s2101_s17 + $0x10] sm:$0xff] %v976_v34  ;;  %1024 = vst [vmem:[%s2101_s17 + $0x90] sm:$0xff] %v992_v9  ;;  %v977_v5 = vmul.f32 %v1828_v3, %v411_v8  ;;  %v403_v23 = vadd.f32 %v2061_v21, %v402_v37  ;;  %v467_v17 = vadd.f32 %v2061_v21, %v466_v27  ;;  %1418 = vrcp.f32 %v808_v6  ;;  %v479_v61 = vpop.f32.mrb[5].mxu1 }
  0xf8   : > { %v920_v35 = vsel %vm918_vm11, %v919_v50, %v917_v54  ;;  %v1407_v22 = vpop.eup %1406  ;;  %v922_v12 = vmul.f32 %v1393_v55, %v1968_v53  ;;  %1006 = vst [vmem:[%s2101_s17] sm:$0xff] %v974_v51  ;;  %1022 = vst [vmem:[%s2101_s17 + $0x80] sm:$0xff] %v990_v31  ;;  %v993_v18 = vmul.f32 %v2045_v49, %v475_v43  ;;  %vm939_vm13 = vcmp.eq.f32.partialorder %v1994_v16, 0.0  ;;  %v1194_v49 = vpop.f32.mrb[4].mxu0 }
  0xf9   : > { %v931_v48 = vsel %vm930_vm6, %v1996_v4, %v929_v40  ;;  %v2117_v3 = vpop.eup %1408  ;;  %1009 = vst [vmem:[%s2101_s17 + $0x18] sm:$0xff] %v977_v5  ;;  %v975_v56 = vmul.f32 %v1848_v33, %v403_v23  ;;  %v991_v42 = vmul.f32 %v2010_v30, %v467_v17  ;;  %1420 = vrcp.f32 %v920_v35  ;;  %v415_v32 = vpop.f32.mrb[5].mxu0 }
  0xfa   : > { %v2123_v55 = vpop.eup %1410  ;;  %1025 = vst [vmem:[%s2101_s17 + $0x98] sm:$0xff] %v993_v18  ;;  %v934_v6 = vsel %vm932_vm8, %v933_v47, %v931_v48  ;;  %1422 = vrcp.f32 %v829_v25  ;;  %v938_v33 = vsel %vm937_vm7, %v1994_v16, %v936_v62  ;;  %vm811_vm14 = vcmp.eq.f32.partialorder %v1758_v41, inf  ;;  %v1195_v2 = vpop.f32.mrb[6].mxu0 }
  0xfb   : > { %v2134_v30 = vpop.eup %1412  ;;  %1007 = vst [vmem:[%s2101_s17 + $0x8] sm:$0xff] %v975_v56  ;;  %1023 = vst [vmem:[%s2101_s17 + $0x88] sm:$0xff] %v991_v42  ;;  %v424_v19 = vadd.f32 %v1194_v49, %v2061_v21  ;;  %v488_v57 = vadd.f32 %v1210_v59, %v2061_v21  ;;  %v812_v4 = vsel %vm811_vm14, %v1758_v41, %v1863_v38  ;;  %vm813_vm15 = vcmp.eq.f32.partialorder %v1758_v41, 0.0  ;;  %v1211_v10 = vpop.f32.mrb[6].mxu1 }
  0xfc   : > { %v2143_v47 = vpop.eup %1414  ;;  %v416_v0 = vadd.f32 %v2061_v21, %v415_v32  ;;  %v480_v15 = vadd.f32 %v2061_v21, %v479_v61  ;;  %v814_v13 = vand.u32 2147483648, %v1758_v41  ;;  %vm923_vm0 = vcmp.eq.f32.partialorder %v1968_v53, inf  ;;  %v418_v24 = vpop.f32.mrb[7].mxu0 }
  0xfd   : > { %v1417_v50 = vpop.eup %1416  ;;  %v980_v14 = vmul.f32 %v1897_v60, %v424_v19  ;;  %v996_v38 = vmul.f32 %v1405_v44, %v488_v57  ;;  %v427_v36 = vadd.f32 %v1195_v2, %v2061_v21  ;;  %v491_v28 = vadd.f32 %v1211_v10, %v2061_v21  ;;  %v482_v11 = vpop.f32.mrb[7].mxu1 }
  0xfe   : > { %v978_v54 = vmul.f32 %v1855_v29, %v416_v0  ;;  %v994_v25 = vmul.f32 %v2081_v1, %v480_v15  ;;  %v419_v26 = vadd.f32 %v2061_v21, %v418_v24  ;;  %v483_v62 = vadd.f32 %v2061_v21, %v482_v11  ;;  %v1198_v41 = vpop.f32.mrb[8].mxu0  ;;  %v1214_v37 = vpop.f32.mrb[8].mxu1 }
  0xff   : > { %1012 = vst [vmem:[%s2101_s17 + $0x30] sm:$0xff] %v980_v14  ;;  %1028 = vst [vmem:[%s2101_s17 + $0xb0] sm:$0xff] %v996_v38  ;;  %v981_v60 = vmul.f32 %v1903_v63, %v427_v36  ;;  %v997_v34 = vmul.f32 %v1407_v22, %v491_v28  ;;  %v941_v29 = vsel %vm939_vm13, %v940_v52, %v938_v33  ;;  %vm925_vm1 = vcmp.eq.f32.partialorder %v1968_v53, 0.0  ;;  %v431_v40 = vpop.f32.mrb[9].mxu0  ;;  %v495_v51 = vpop.f32.mrb[9].mxu1 }
 0x100   : > { %v815_v1 = vsel %vm813_vm15, %v814_v13, %v812_v4  ;;  %1010 = vst [vmem:[%s2101_s17 + $0x20] sm:$0xff] %v978_v54  ;;  %1026 = vst [vmem:[%s2101_s17 + $0xa0] sm:$0xff] %v994_v25  ;;  %v979_v9 = vmul.f32 %v1873_v45, %v419_v26  ;;  %v995_v8 = vmul.f32 %v2094_v39, %v483_v62  ;;  %1424 = vrcp.f32 %v934_v6  ;;  %v1199_v23 = vpop.f32.mrb[10].mxu0  ;;  %v1215_v17 = vpop.f32.mrb[10].mxu1 }
 0x101   : > { %v924_v63 = vsel %vm923_vm0, %v1968_v53, %v922_v12  ;;  %1013 = vst [vmem:[%s2101_s17 + $0x38] sm:$0xff] %v981_v60  ;;  %1029 = vst [vmem:[%s2101_s17 + $0xb8] sm:$0xff] %v997_v34  ;;  %v926_v16 = vand.u32 2147483648, %v1968_v53  ;;  %v2176_v52 = vpop.eup %1418  ;;  %1426 = vrcp.f32 %v941_v29  ;;  %v440_v27 = vadd.f32 %v1198_v41, %v2061_v21  ;;  %v434_v18 = vpop.f32.mrb[11].mxu0 }
 0x102   : > { %1011 = vst [vmem:[%s2101_s17 + $0x28] sm:$0xff] %v979_v9  ;;  %1027 = vst [vmem:[%s2101_s17 + $0xa8] sm:$0xff] %v995_v8  ;;  %v504_v39 = vadd.f32 %v1214_v37, %v2061_v21  ;;  %1428 = vrcp.f32 %v815_v1  ;;  %v432_v44 = vadd.f32 %v2061_v21, %v431_v40  ;;  %v496_v5 = vadd.f32 %v2061_v21, %v495_v51  ;;  %v498_v48 = vpop.f32.mrb[11].mxu1 }
 0x103   : > { %v1421_v45 = vpop.eup %1420  ;;  %v927_v31 = vsel %vm925_vm1, %v926_v16, %v924_v63  ;;  %v984_v35 = vmul.f32 %v1936_v7, %v440_v27  ;;  %v443_v12 = vadd.f32 %v1199_v23, %v2061_v21  ;;  %v507_v53 = vadd.f32 %v1215_v17, %v2061_v21 }
 0x104   : > { %v1423_v43 = vpop.eup %1422  ;;  %1430 = vrcp.f32 %v927_v31  ;;  %v1000_v22 = vmul.f32 %v1417_v50, %v504_v39  ;;  %v982_v56 = vmul.f32 %v1928_v20, %v432_v44  ;;  %v998_v42 = vmul.f32 %v2117_v3, %v496_v5 }
 0x105   : > { %v435_v49 = vadd.f32 %v2061_v21, %v434_v18  ;;  %v499_v59 = vadd.f32 %v2061_v21, %v498_v48  ;;  %1016 = vst [vmem:[%s2101_s17 + $0x50] sm:$0xff] %v984_v35  ;;  %v985_v7 = vmul.f32 %v1979_v58, %v443_v12  ;;  %v1001_v6 = vmul.f32 %v2143_v47, %v507_v53 }
 0x106   : > { %1032 = vst [vmem:[%s2101_s17 + $0xd0] sm:$0xff] %v1000_v22  ;;  %1014 = vst [vmem:[%s2101_s17 + $0x40] sm:$0xff] %v982_v56  ;;  %v1202_v20 = vpop.f32.mrb[12].mxu0  ;;  %v1218_v3 = vpop.f32.mrb[12].mxu1 }
 0x107   : > { %1030 = vst [vmem:[%s2101_s17 + $0xc0] sm:$0xff] %v998_v42  ;;  %v983_v33 = vmul.f32 %v1961_v46, %v435_v49  ;;  %v999_v19 = vmul.f32 %v2123_v55, %v499_v59  ;;  %1017 = vst [vmem:[%s2101_s17 + $0x58] sm:$0xff] %v985_v7  ;;  %v456_v32 = vadd.f32 %v1202_v20, %v2061_v21  ;;  %v447_v61 = vpop.f32.mrb[13].mxu0  ;;  %v511_v4 = vpop.f32.mrb[13].mxu1 }
 0x108   : > { %1033 = vst [vmem:[%s2101_s17 + $0xd8] sm:$0xff] %v1001_v6  ;;  %v520_v58 = vadd.f32 %v1218_v3, %v2061_v21  ;;  %v448_v46 = vadd.f32 %v2061_v21, %v447_v61  ;;  %v512_v55 = vadd.f32 %v2061_v21, %v511_v4  ;;  %v1203_v0 = vpop.f32.mrb[14].mxu0  ;;  %v1219_v15 = vpop.f32.mrb[14].mxu1 }
 0x109   : > { %1015 = vst [vmem:[%s2101_s17 + $0x48] sm:$0xff] %v983_v33  ;;  %1031 = vst [vmem:[%s2101_s17 + $0xc8] sm:$0xff] %v999_v19  ;;  %v988_v10 = vmul.f32 %v2134_v30, %v456_v32  ;;  %v459_v50 = vadd.f32 %v1203_v0, %v2061_v21  ;;  %v523_v14 = vadd.f32 %v1219_v15, %v2061_v21  ;;  %v450_v38 = vpop.f32.mrb[15].mxu0  ;;  %v514_v36 = vpop.f32.mrb[15].mxu1 }
 0x10a   : > { %v1425_v57 = vpop.eup %1424  ;;  %v986_v24 = vmul.f32 %v2176_v52, %v448_v46  ;;  %v1002_v11 = vmul.f32 %v1421_v45, %v512_v55  ;;  %v451_v54 = vadd.f32 %v2061_v21, %v450_v38  ;;  %v515_v30 = vadd.f32 %v2061_v21, %v514_v36 }
 0x10b   : > { %v1427_v47 = vpop.eup %1426  ;;  %v1004_v13 = vmul.f32 %v1425_v57, %v520_v58  ;;  %1020 = vst [vmem:[%s2101_s17 + $0x70] sm:$0xff] %v988_v10  ;;  %v989_v25 = vmul.f32 %v1423_v43, %v459_v50 }
 0x10c   : > { %v1429_v2 = vpop.eup %1428  ;;  %v1005_v26 = vmul.f32 %v1427_v47, %v523_v14  ;;  %1018 = vst [vmem:[%s2101_s17 + $0x60] sm:$0xff] %v986_v24  ;;  %1034 = vst [vmem:[%s2101_s17 + $0xe0] sm:$0xff] %v1002_v11 }
 0x10d   : > { %1036 = vst [vmem:[%s2101_s17 + $0xf0] sm:$0xff] %v1004_v13  ;;  %v987_v62 = vmul.f32 %v1429_v2, %v451_v54  ;;  %1021 = vst [vmem:[%s2101_s17 + $0x78] sm:$0xff] %v989_v25 }
 0x10e   : > { %v1431_v28 = vpop.eup %1430  ;;  %1037 = vst [vmem:[%s2101_s17 + $0xf8] sm:$0xff] %v1005_v26 }
 0x10f   : > { %v1003_v60 = vmul.f32 %v1431_v28, %v515_v30  ;;  %1019 = vst [vmem:[%s2101_s17 + $0x68] sm:$0xff] %v987_v62 }
 0x111   : > { %1035 = vst [vmem:[%s2101_s17 + $0xe8] sm:$0xff] %v1003_v60 }
 0x112   : > { %1445 = shalt.err (!%p1442_p3)
}
 0x113   : > { %s1446_s4 = scalar_lea.hbm %s2222_s25, 4096  ;;  %s1450_s7 = scalar_lea.hbm %s2278_s3, 8192 }
 0x114   : > { %p1447_p4 = scmp.ne.s32.totalorder %s2222_s25, %s1446_s4  ;;  %p1451_p9 = scmp.lt.u32.totalorder %s2222_s25, %s2278_s3 }
 0x115   : > { %p1452_p10 = scmp.lt.u32.totalorder %s1450_s7, %s1446_s4  ;;  %p1454_p12 = scmp.lt.u32.totalorder %s1446_s4, %s2222_s25 }
 0x116   : > { %p1448_p7 = pnand %p1447_p4, %p1557_p5 }
 0x117   : > { %p1453_p11 = por %p1452_p10, %p1451_p9 }
 0x118   : > { %p1449_p8 = pneg %p1448_p7 }
 0x119   : > { %p1455_p13 = por %p1454_p12, %p1453_p11 }
 0x11b   : > { %p1456_p0 = pnand %p1455_p13, %p1449_p8 }
 0x11d   : > { %1459 = shalt.err (!%p1456_p0)
}
 0x11e   : > { %s1497_s10 = smov 128   ;;  %s1498_s11 = smov 8  }
 0x11f   : > { %1228 = dma.vmem_to_hbm [thread:$0]  (%p1557_p5), %s2224_s20, 4096, %s2222_s25, %s2234_s26, %s1497_s10, %s1497_s10, %s1498_s11  }
 0x120 PF: > { %p1234_p1 = scmp.ge.s32.totalorder %s1494_s15, 2  ;;  %s1067_s17 = sand.u32 1, %s1482_s12  }
 0x121   : > { %s1068_s19 = scalar_lea.sflag [#allocation3], %s1067_s17 }
 0x122   : > { %p1231_p2 = pnand %p1234_p1, %p1561_p6 }
 0x124   : > { %1477 = dma.done.wait (!%p1231_p2), %s1068_s19, 4096  }
 0x125   : > { %1479 = vsyncadd (!%p1231_p2), %s1068_s19, 4294963200  ;;  %p13_p3 = scmp.ge.s32.totalorder %s1544_s18, 4   ;;  %s2281_s12 = smov %s1486_s13 }
 0x126   : > { %s2282_s13 = smov %s1490_s14  ;;  %s2283_s14 = smov %s1555_s21 }
 0x127   : > { %s2284_s15 = smov %s1544_s18  ;;  %15 = sbr.rel (!%p13_p3) target bundleno = 3 (0x3), region = 67 }
 0x12e   :  { %1073 = vsyncpa [#allocation3], 1 }
 0x12f   :  { %1075 = vsyncpa [#allocation3 + $0x1], 1 }

</bundles_post_ra>
